<compile_context>
chip_gen: v7x
topology: tpu7x:2x2x1
jax: 0.10.0
libtpu: 0.0.40
codegen_flags: <defaults>
</compile_context>

<pallas_src>
import functools

import jax
import jax.numpy as jnp
from jax.experimental import pallas as pl
from jax.experimental.pallas import tpu as pltpu

DIM = 32
BN_EPS = 1e-5
VMEM_LIMIT = 48 * 1024 * 1024


def _cparams(*sem):
    return pltpu.CompilerParams(dimension_semantics=sem,
                                vmem_limit_bytes=VMEM_LIMIT)


def _pick_th(Ho, taps, Wo, Cout):
    """Output-row tile for the 3x3 conv kernel: a divisor of Ho, capped by the
    per-step unroll budget (taps*th dots) and the output-tile footprint."""
    cap = min(max(1, 128 // max(taps, 1)),
              max(1, (2 << 20) // max(1, Wo * Cout * 4)),
              Ho)
    best = 1
    for d in range(1, Ho + 1):
        if Ho % d == 0 and d <= cap:
            best = d
    return best


def _pick_rows(R, row_bytes, cap_bytes, max_rows):
    """Row tile for 2-D (rows, lanes) kernels: largest multiple-of-8 divisor
    of R within the byte/row caps; falls back to the full extent (keeps the
    (8,128) block-shape rule satisfied)."""
    cap = min(max_rows, R, max(1, cap_bytes // max(row_bytes, 1)))
    divs = [d for d in range(1, R + 1) if R % d == 0 and d <= cap]
    mult8 = [d for d in divs if d % 8 == 0]
    if mult8:
        return max(mult8)
    return R


def _finalize_bn(ssum, ssq, cnt, gamma, beta):
    mean = ssum / cnt
    var = jnp.maximum(ssq / cnt - mean * mean, 0.0)
    a = gamma * jax.lax.rsqrt(var + BN_EPS)
    b = beta - mean * a
    return a, b


# ----------------------------------------------------------------------------
# Fused KxK conv + BatchNorm-statistics kernel (im2col-free, 3x3 path)
# ----------------------------------------------------------------------------
def _conv_bn_stats_kernel(x_ref, w_ref, y_ref, st_ref, *, kh, kw, s, th, Wo, Cout):
    """x_ref  : (1, s*s, Hq, Wq, Cin)  bf16  stride-phase-split, zero-padded
       w_ref  : (kh*kw, Cin, Cout)     bf16  tap-major weights
       y_ref  : (1, th, Wo, Cout)      bf16  conv output row-tile
       st_ref : (1, 1, 2, Cout)        f32   per-tile [sum, sum_sq]"""
    t = pl.program_id(1)
    ws = [w_ref[i] for i in range(kh * kw)]          # hoist weight loads
    s_sum = jnp.zeros((1, Cout), jnp.float32)
    s_sq = jnp.zeros((1, Cout), jnp.float32)
    for r in range(th):
        hbase = t * th + r
        acc = jnp.zeros((Wo, Cout), jnp.float32)
        for di in range(kh):
            for dj in range(kw):
                phase = (di % s) * s + (dj % s)
                xr = x_ref[0, phase, hbase + di // s, pl.ds(dj // s, Wo), :]
                acc = acc + jnp.dot(xr, ws[di * kw + dj],
                                    preferred_element_type=jnp.float32)
        y_ref[0, r] = acc.astype(y_ref.dtype)
        s_sum = s_sum + jnp.sum(acc, axis=0, keepdims=True)
        s_sq = s_sq + jnp.sum(acc * acc, axis=0, keepdims=True)
    st_ref[0, 0, 0:1, :] = s_sum
    st_ref[0, 0, 1:2, :] = s_sq


def _conv_kxk_bn(x, w, gamma, beta, stride, pad):
    N, H, W, Cin = x.shape
    kh, kw, _, Cout = w.shape
    s = stride
    Ho = (H + 2 * pad - kh) // s + 1
    Wo = (W + 2 * pad - kw) // s + 1
    Hq = Ho + (kh - 1) // s
    Wq = Wo + (kw - 1) // s
    th = _pick_th(Ho, kh * kw, Wo, Cout)
    T = Ho // th

    # Zero-padded input of phase-aligned spatial size (s*Hq, s*Wq).
    xb = x.astype(jnp.bfloat16)
    Hfit = min(H, s * Hq - pad)
    Wfit = min(W, s * Wq - pad)
    xpad = jnp.zeros((N, s * Hq, s * Wq, Cin), jnp.bfloat16)
    xpad = xpad.at[:, pad:pad + Hfit, pad:pad + Wfit, :].set(xb[:, :Hfit, :Wfit, :])
    # Stride-phase split (space-to-depth): (N, s*s, Hq, Wq, Cin)
    xph = (xpad.reshape(N, Hq, s, Wq, s, Cin)
                .transpose(0, 2, 4, 1, 3, 5)
                .reshape(N, s * s, Hq, Wq, Cin))
    wt = w.reshape(kh * kw, Cin, Cout).astype(jnp.bfloat16)

    kern = functools.partial(_conv_bn_stats_kernel, kh=kh, kw=kw, s=s, th=th,
                             Wo=Wo, Cout=Cout)
    y, stats = pl.pallas_call(
        kern,
        out_shape=(jax.ShapeDtypeStruct((N, Ho, Wo, Cout), jnp.bfloat16),
                   jax.ShapeDtypeStruct((N, T, 2, Cout), jnp.float32)),
        grid=(N, T),
        in_specs=[pl.BlockSpec((1, s * s, Hq, Wq, Cin), lambda nn, tt: (nn, 0, 0, 0, 0)),
                  pl.BlockSpec((kh * kw, Cin, Cout), lambda nn, tt: (0, 0, 0))],
        out_specs=(pl.BlockSpec((1, th, Wo, Cout), lambda nn, tt: (nn, tt, 0, 0)),
                   pl.BlockSpec((1, 1, 2, Cout), lambda nn, tt: (nn, tt, 0, 0))),
        compiler_params=_cparams("parallel", "arbitrary"),
    )(xph, wt)

    cnt = float(N * Ho * Wo)
    a, b = _finalize_bn(jnp.sum(stats[:, :, 0, :], axis=(0, 1)),
                        jnp.sum(stats[:, :, 1, :], axis=(0, 1)), cnt, gamma, beta)
    return y, a, b


# ----------------------------------------------------------------------------
# Flat 1x1 conv + BN-statistics kernel: row-tiled matmul over (N*H*W, Cin)
# ----------------------------------------------------------------------------
def _matmul_stats_kernel(x_ref, w_ref, y_ref, st_ref):
    acc = jnp.dot(x_ref[...], w_ref[...], preferred_element_type=jnp.float32)
    y_ref[...] = acc.astype(y_ref.dtype)
    st_ref[0, 0:1, :] = jnp.sum(acc, axis=0, keepdims=True)
    st_ref[0, 1:2, :] = jnp.sum(acc * acc, axis=0, keepdims=True)


def _conv1x1_bn(x, w, gamma, beta, stride):
    if stride > 1:
        x = x[:, ::stride, ::stride, :]           # exact for 1x1 strided conv
    N, Ho, Wo, Cin = x.shape
    Cout = w.shape[-1]
    M = N * Ho * Wo
    x2 = x.reshape(M, Cin).astype(jnp.bfloat16)
    w2 = w.reshape(Cin, Cout).astype(jnp.bfloat16)
    tm = _pick_rows(M, row_bytes=(Cin + Cout) * 2, cap_bytes=2 << 20, max_rows=512)
    T = M // tm
    y, stats = pl.pallas_call(
        _matmul_stats_kernel,
        out_shape=(jax.ShapeDtypeStruct((M, Cout), jnp.bfloat16),
                   jax.ShapeDtypeStruct((T, 2, Cout), jnp.float32)),
        grid=(T,),
        in_specs=[pl.BlockSpec((tm, Cin), lambda i: (i, 0)),
                  pl.BlockSpec((Cin, Cout), lambda i: (0, 0))],
        out_specs=(pl.BlockSpec((tm, Cout), lambda i: (i, 0)),
                   pl.BlockSpec((1, 2, Cout), lambda i: (i, 0, 0))),
        compiler_params=_cparams("parallel"),
    )(x2, w2)
    a, b = _finalize_bn(jnp.sum(stats[:, 0, :], axis=0),
                        jnp.sum(stats[:, 1, :], axis=0), float(M), gamma, beta)
    return y.reshape(N, Ho, Wo, Cout), a, b


def conv_bn(x, w, gamma, beta, stride, pad):
    """conv2d (bias dropped - it cancels in training-mode BN) + batch stats.
    Returns (y bf16 (N,Ho,Wo,Cout), a (Cout,), b (Cout,)): bn(y) = a*y + b."""
    kh, kw = w.shape[0], w.shape[1]
    if kh == 1 and kw == 1:
        return _conv1x1_bn(x, w, gamma, beta, stride)
    return _conv_kxk_bn(x, w, gamma, beta, stride, pad)


# ----------------------------------------------------------------------------
# Fused BN-apply / ReLU / residual element-wise kernels (lane-dense 2-D tiles)
# ----------------------------------------------------------------------------
def _bn_relu_kernel(y_ref, a_ref, b_ref, o_ref):
    v = y_ref[...].astype(jnp.float32) * a_ref[...] + b_ref[...]
    o_ref[...] = jnp.maximum(v, 0.0).astype(o_ref.dtype)


def _bn_relu_add_relu_kernel(y_ref, a_ref, b_ref, r_ref, o_ref):
    # relu( relu(bn(y)) + skip )  -- exact ResidualBlock epilogue
    v = jnp.maximum(y_ref[...].astype(jnp.float32) * a_ref[...] + b_ref[...], 0.0)
    v = v + r_ref[...].astype(jnp.float32)
    o_ref[...] = jnp.maximum(v, 0.0).astype(o_ref.dtype)


def _bn_relu_bn_add_relu_kernel(y_ref, a_ref, b_ref, d_ref, a2_ref, b2_ref, o_ref):
    # relu( relu(bn(y)) + bn3(down) )
    v = jnp.maximum(y_ref[...].astype(jnp.float32) * a_ref[...] + b_ref[...], 0.0)
    v = v + d_ref[...].astype(jnp.float32) * a2_ref[...] + b2_ref[...]
    o_ref[...] = jnp.maximum(v, 0.0).astype(o_ref.dtype)


def _ew_call(kernel, out_dtype, arrays):
    R, L = arrays[0].shape
    tr = _pick_rows(R, row_bytes=L * 4, cap_bytes=1 << 20, max_rows=256)
    in_specs = []
    for arr in arrays:
        if arr.shape[0] == 1:
            in_specs.append(pl.BlockSpec((1, L), lambda i: (0, 0)))
        else:
            in_specs.append(pl.BlockSpec((tr, L), lambda i: (i, 0)))
    return pl.pallas_call(
        kernel,
        out_shape=jax.ShapeDtypeStruct((R, L), out_dtype),
        grid=(R // tr,),
        in_specs=in_specs,
        out_specs=pl.BlockSpec((tr, L), lambda i: (i, 0)),
        compiler_params=_cparams("parallel"),
    )(*arrays)


def _row(v, Wo):
    # per-channel vector -> lane-dense (1, Wo*C) row matching the (rows, W*C) view
    return jnp.tile(v, (Wo,)).reshape(1, -1).astype(jnp.float32)


def bn_relu(y, a, b):
    N, Ho, Wo, C = y.shape
    out = _ew_call(_bn_relu_kernel, jnp.bfloat16,
                   [y.reshape(N * Ho, Wo * C), _row(a, Wo), _row(b, Wo)])
    return out.reshape(N, Ho, Wo, C)


def bn_relu_add_relu(y, a, b, skip):
    N, Ho, Wo, C = y.shape
    out = _ew_call(_bn_relu_add_relu_kernel, jnp.bfloat16,
                   [y.reshape(N * Ho, Wo * C), _row(a, Wo), _row(b, Wo),
                    skip.reshape(N * Ho, Wo * C)])
    return out.reshape(N, Ho, Wo, C)


def bn_relu_bn_add_relu(y, a, b, d, a2, b2):
    N, Ho, Wo, C = y.shape
    out = _ew_call(_bn_relu_bn_add_relu_kernel, jnp.bfloat16,
                   [y.reshape(N * Ho, Wo * C), _row(a, Wo), _row(b, Wo),
                    d.reshape(N * Ho, Wo * C), _row(a2, Wo), _row(b2, Wo)])
    return out.reshape(N, Ho, Wo, C)


# ----------------------------------------------------------------------------
# Final 1x1 conv with bias (no BN): row-tiled matmul, 128-lane-dense f32 output
# ----------------------------------------------------------------------------
def _matmul_bias_kernel(x_ref, w_ref, b_ref, o_ref):
    o_ref[...] = (jnp.dot(x_ref[...], w_ref[...],
                          preferred_element_type=jnp.float32) + b_ref[...])


def conv1x1_bias(x, w, b):
    N, H, W, Cin = x.shape
    Cout = w.shape[-1]
    M = N * H * W
    x2 = x.reshape(M, Cin).astype(jnp.bfloat16)
    w2 = w.reshape(Cin, Cout).astype(jnp.bfloat16)
    b2 = b.reshape(1, Cout).astype(jnp.float32)
    tm = _pick_rows(M, row_bytes=Cin * 2 + Cout * 4, cap_bytes=2 << 20, max_rows=512)
    out = pl.pallas_call(
        _matmul_bias_kernel,
        out_shape=jax.ShapeDtypeStruct((M, Cout), jnp.float32),
        grid=(M // tm,),
        in_specs=[pl.BlockSpec((tm, Cin), lambda i: (i, 0)),
                  pl.BlockSpec((Cin, Cout), lambda i: (0, 0)),
                  pl.BlockSpec((1, Cout), lambda i: (0, 0))],
        out_specs=pl.BlockSpec((tm, Cout), lambda i: (i, 0)),
        compiler_params=_cparams("parallel"),
    )(x2, w2, b2)
    return out.reshape(N, H, W, Cout)


# ----------------------------------------------------------------------------
# conv1 glue: im2col once (Cin=3 is lane-hostile), then flat 1x1-conv kernel
# ----------------------------------------------------------------------------
def _im2col(x, kh, kw, stride, pad):
    N, H, W, C = x.shape
    xp = jnp.pad(x, ((0, 0), (pad, pad), (pad, pad), (0, 0)))
    Ho = (H + 2 * pad - kh) // stride + 1
    Wo = (W + 2 * pad - kw) // stride + 1
    cols = [xp[:, i:i + stride * Ho:stride, j:j + stride * Wo:stride, :]
            for i in range(kh) for j in range(kw)]
    return jnp.concatenate(cols, axis=-1)          # (N, Ho, Wo, kh*kw*C)


# ----------------------------------------------------------------------------
# Model forward (ResidualBlock + BasicEncoder4), norm_fn='batch', dropout=0
# ----------------------------------------------------------------------------
def residual_block(x, p, stride):
    y1, a1, b1 = conv_bn(x, p["conv1_w"], p["norm1_g"], p["norm1_b"], stride, 1)
    h = bn_relu(y1, a1, b1)
    y2, a2, b2 = conv_bn(h, p["conv2_w"], p["norm2_g"], p["norm2_b"], 1, 1)
    if stride == 1:
        return bn_relu_add_relu(y2, a2, b2, x)
    d, a3, b3 = conv_bn(x, p["down_w"], p["norm3_g"], p["norm3_b"], stride, 0)
    return bn_relu_bn_add_relu(y2, a2, b2, d, a3, b3)


def basic_encoder4(x, params):
    # x: (b, n, 3, h, w)  -- PyTorch NCHW-with-extra-leading-dim convention
    b, n, c1, h1, w1 = x.shape
    x = x.reshape(b * n, c1, h1, w1).transpose(0, 2, 3, 1)        # -> NHWC f32

    # conv1 (7x7 s2 p3) as a flat 1x1 conv over im2col patches + BN + ReLU.
    patches = _im2col(x.astype(jnp.bfloat16), 7, 7, 2, 3)          # (N,Ho,Wo,147)
    w7 = params["conv1_w"].reshape(1, 1, 7 * 7 * 3, DIM)
    y, a, bb = conv_bn(patches, w7, params["norm1_g"], params["norm1_b"], 1, 0)
    x = bn_relu(y, a, bb)

    for p, stride in params["layer1"]:
        x = residual_block(x, p, stride)
    for p, stride in params["layer2"]:
        x = residual_block(x, p, stride)

    x = conv1x1_bias(x, params["conv2_w"], params["conv2_b"])      # f32 output

    N, h2, w2, c2 = x.shape
    return x.transpose(0, 3, 1, 2).reshape(b, n, c2, h2, w2)


# ----------------------------------------------------------------------------
# Deterministic parameter initialization (matches module's __init__ shapes)
# ----------------------------------------------------------------------------
def init_params(key, output_dim=128):
    kit = iter(jax.random.split(key, 64))

    def conv_init(kh, kw, cin, cout):
        # kaiming_normal_(mode='fan_out', nonlinearity='relu')
        fan_out = cout * kh * kw
        std = (2.0 / fan_out) ** 0.5
        w = std * jax.random.normal(next(kit), (kh, kw, cin, cout), jnp.float32)
        bound = 1.0 / ((cin * kh * kw) ** 0.5)
        b = jax.random.uniform(next(kit), (cout,), jnp.float32, -bound, bound)
        return w, b  # biases before BatchNorm are unused (cancel exactly in BN)

    def bn_init(c):
        return jnp.ones((c,), jnp.float32), jnp.zeros((c,), jnp.float32)

    def res_block_params(cin, cout, stride):
        p = {}
        p["conv1_w"], p["conv1_b"] = conv_init(3, 3, cin, cout)
        p["conv2_w"], p["conv2_b"] = conv_init(3, 3, cout, cout)
        p["norm1_g"], p["norm1_b"] = bn_init(cout)
        p["norm2_g"], p["norm2_b"] = bn_init(cout)
        if stride != 1:
            p["down_w"], p["down_b"] = conv_init(1, 1, cin, cout)
            p["norm3_g"], p["norm3_b"] = bn_init(cout)
        return p, stride

    params = {}
    params["conv1_w"], params["conv1_b"] = conv_init(7, 7, 3, DIM)
    params["norm1_g"], params["norm1_b"] = bn_init(DIM)
    params["layer1"] = [
        res_block_params(DIM, DIM, 1),
        res_block_params(DIM, DIM, 1),
    ]
    params["layer2"] = [
        res_block_params(DIM, 2 * DIM, 2),
        res_block_params(2 * DIM, 2 * DIM, 1),
    ]
    params["conv2_w"], params["conv2_b"] = conv_init(1, 1, 2 * DIM, output_dim)
    return params


if __name__ == "__main__":
    key = jax.random.PRNGKey(0)
    pkey, xkey = jax.random.split(key)

    params = init_params(pkey, output_dim=128)

    b, n, c, h, w = 2, 1, 3, 16, 16
    x = jax.random.normal(xkey, (b, n, c, h, w), jnp.float32)

    out = basic_encoder4(x, params)
    out = jax.block_until_ready(out)

    assert out.shape == (b, n, 128, h // 4, w // 4), out.shape
    assert out.dtype == jnp.float32
    print("KERNEL_OK")
</pallas_src>

<mosaic_0001>
module attributes {stable_mosaic.version = 11 : i64} {
  func.func @_matmul_stats_kernel(%arg0: i32, %arg1: memref<128x147xbf16, #tpu.memory_space<vmem>>, %arg2: memref<147x32xbf16, #tpu.memory_space<vmem>>, %arg3: memref<128x32xbf16, #tpu.memory_space<vmem>>, %arg4: memref<1x2x32xf32, #tpu.memory_space<vmem>>) attributes {dimension_semantics = [#tpu.dimension_semantics<parallel>], iteration_bounds = array<i64: 1>, scalar_prefetch = 0 : i64, scratch_operands = 0 : i64, tpu.core_type = #tpu.core_type<tc>, window_params = [{transform_indices = @transform_0, window_bounds = array<i64: 128, 147>}, {pipeline_mode = #tpu.pipeline_mode<synchronous>, transform_indices = @transform_1, window_bounds = array<i64: 147, 32>}, {transform_indices = @transform_2, window_bounds = array<i64: 128, 32>}, {transform_indices = @transform_3, window_bounds = array<i64: 1, 2, 32>}]} {
    %c0 = arith.constant 0 : index
    %c0_0 = arith.constant 0 : index
    %0 = vector.load %arg1[%c0, %c0_0] : memref<128x147xbf16, #tpu.memory_space<vmem>>, vector<128x147xbf16>
    %c0_1 = arith.constant 0 : index
    %c0_2 = arith.constant 0 : index
    %1 = vector.load %arg2[%c0_1, %c0_2] : memref<147x32xbf16, #tpu.memory_space<vmem>>, vector<147x32xbf16>
    %cst = arith.constant dense<0.000000e+00> : vector<128x32xf32>
    %2 = tpu.matmul %0, %1, %cst {dimension_numbers = #tpu.dot_dimension_numbers<[1], [0], [0], [1], [0, 0, 1, 1], [], []>} : vector<128x147xbf16>, vector<147x32xbf16>, vector<128x32xf32> -> vector<128x32xf32>
    %3 = arith.truncf %2 : vector<128x32xf32> to vector<128x32xbf16>
    %c0_3 = arith.constant 0 : index
    %c0_4 = arith.constant 0 : index
    %4 = vector.load %arg3[%c0_3, %c0_4] : memref<128x32xbf16, #tpu.memory_space<vmem>>, vector<128x32xbf16>
    tpu.vector_store %arg3[%c0_3, %c0_4], %3 {strides = array<i32>} : memref<128x32xbf16, #tpu.memory_space<vmem>>, vector<128x32xbf16>,
    %cst_5 = arith.constant dense<0.000000e+00> : vector<32xf32>
    %5 = vector.multi_reduction <add>, %2, %cst_5 [0] : vector<128x32xf32> to vector<32xf32>
    %6 = vector.shape_cast %5 : vector<32xf32> to vector<1x32xf32>
    %c0_6 = arith.constant 0 : index
    %c0_7 = arith.constant 0 : index
    %c0_8 = arith.constant 0 : index
    %7 = vector.load %arg4[%c0_6, %c0_7, %c0_8] : memref<1x2x32xf32, #tpu.memory_space<vmem>>, vector<1x1x32xf32>
    %8 = vector.shape_cast %7 : vector<1x1x32xf32> to vector<1x32xf32>
    %9 = vector.shape_cast %6 : vector<1x32xf32> to vector<1x1x32xf32>
    tpu.vector_store %arg4[%c0_6, %c0_7, %c0_8], %9 {strides = array<i32>} : memref<1x2x32xf32, #tpu.memory_space<vmem>>, vector<1x1x32xf32>,
    %10 = arith.mulf %2, %2 : vector<128x32xf32>
    %cst_9 = arith.constant dense<0.000000e+00> : vector<32xf32>
    %11 = vector.multi_reduction <add>, %10, %cst_9 [0] : vector<128x32xf32> to vector<32xf32>
    %12 = vector.shape_cast %11 : vector<32xf32> to vector<1x32xf32>
    %c0_10 = arith.constant 0 : index
    %c1 = arith.constant 1 : index
    %c0_11 = arith.constant 0 : index
    %13 = vector.load %arg4[%c0_10, %c1, %c0_11] : memref<1x2x32xf32, #tpu.memory_space<vmem>>, vector<1x1x32xf32>
    %14 = vector.shape_cast %13 : vector<1x1x32xf32> to vector<1x32xf32>
    %15 = vector.shape_cast %12 : vector<1x32xf32> to vector<1x1x32xf32>
    tpu.vector_store %arg4[%c0_10, %c1, %c0_11], %15 {strides = array<i32>} : memref<1x2x32xf32, #tpu.memory_space<vmem>>, vector<1x1x32xf32>,
    return
  }
  func.func @transform_0(%arg0: i32) -> (i32, i32) {
    %c0_i32 = arith.constant 0 : i32
    %c0_i32_0 = arith.constant 0 : i32
    return %arg0, %c0_i32 : i32, i32
  }
  func.func @transform_1(%arg0: i32) -> (i32, i32) {
    %c0_i32 = arith.constant 0 : i32
    %c0_i32_0 = arith.constant 0 : i32
    %c0_i32_1 = arith.constant 0 : i32
    return %c0_i32, %c0_i32_0 : i32, i32
  }
  func.func @transform_2(%arg0: i32) -> (i32, i32) {
    %c0_i32 = arith.constant 0 : i32
    %c0_i32_0 = arith.constant 0 : i32
    return %arg0, %c0_i32 : i32, i32
  }
  func.func @transform_3(%arg0: i32) -> (i32, i32, i32) {
    %c0_i32 = arith.constant 0 : i32
    %c0_i32_0 = arith.constant 0 : i32
    %c0_i32_1 = arith.constant 0 : i32
    return %arg0, %c0_i32, %c0_i32_0 : i32, i32, i32
  }
}

</mosaic_0001>

<bundles_post_ra>
// kernel: tpu_custom_call.1
= control target key start
LH: loop header
LB: loop body
LE: loop exit
PB: predicated region body
PF: predicated region fallthrough
CT: control target
= control target key end

     0   :  { %v648_v1 = vmov 0   ;;  %vm179_vm0 = vcmask 154624   ;;  %s907_s0 = inlined_call_operand.vmem [shape: bf16[128,147], index: 0, kind: input, shape index: {}]   ;;  %s908_s1 = inlined_call_operand.vmem [shape: bf16[147,32], index: 1, kind: input, shape index: {}]   ;;  %s909_s2 = inlined_call_operand.vmem [shape: bf16[128,32], index: 2, kind: output, shape index: {0}]   ;;  %s910_s3 = inlined_call_operand.hbm [shape: f32[1,2,32], index: 3, kind: output, shape index: {1}]  }
   0x1   :  { %v590_v0 = vld [vmem:[%s908_s1] sm:$0xff]   ;;  %211 = vmatprep.subr.bf16.mxu0 %v648_v1  ;;  %567 = vmatprep.subr.bf16.mxu1 %v648_v1  ;;  %v591_v2 = vld [vmem:[%s908_s1 + $0x8] sm:$0xff]   ;;  %v592_v3 = vld [vmem:[%s908_s1 + $0x10] sm:$0xff]  }
   0x2   :  { %212 = vmatpush1.bf16.msra.mxu0 %v590_v0  ;;  %577 = vmatpush1.bf16.msra.mxu1 %v590_v0  ;;  %v593_v4 = vld [vmem:[%s908_s1 + $0x18] sm:$0xff]   ;;  %v602_v5 = vld [vmem:[%s907_s0 + $0x4] ss:$8 sps:$4 sm:$0xff]  }
   0x3   :  { %213 = vmatprep.subr.bf16.mxu0 %v648_v1  ;;  %568 = vmatprep.subr.bf16.mxu1 %v648_v1  ;;  %v608_v6 = vld [vmem:[%s907_s0 + $0x44] ss:$8 sps:$4 sm:$0xff]  }
   0x4   :  { %527 = vmatprep.mubr.msk.bf16.mxu0 %vm179_vm0, %v602_v5  ;;  %v594_v7 = vld [vmem:[%s908_s1 + $0x20] sm:$0xff]   ;;  %531 = vmatprep.mubr.msk.bf16.mxu1 %vm179_vm0, %v608_v6  ;;  %v595_v8 = vld [vmem:[%s908_s1 + $0x28] sm:$0xff]  }
   0x6   :  { %214 = vmatpush1.bf16.msra.mxu0 %v591_v2  ;;  %578 = vmatpush1.bf16.msra.mxu1 %v591_v2 }
   0x7   :  { %215 = vmatprep.subr.bf16.mxu0 %v648_v1  ;;  %569 = vmatprep.subr.bf16.mxu1 %v648_v1 }
   0xa   :  { %216 = vmatpush1.bf16.msra.mxu0 %v592_v3  ;;  %579 = vmatpush1.bf16.msra.mxu1 %v592_v3 }
   0xb   :  { %217 = vmatprep.subr.bf16.mxu0 %v648_v1  ;;  %570 = vmatprep.subr.bf16.mxu1 %v648_v1 }
   0xe   :  { %218 = vmatpush1.bf16.msra.mxu0 %v593_v4  ;;  %580 = vmatpush1.bf16.msra.mxu1 %v593_v4 }
   0xf   :  { %219 = vmatprep.subr.bf16.mxu0 %v648_v1  ;;  %571 = vmatprep.subr.bf16.mxu1 %v648_v1 }
  0x12   :  { %220 = vmatpush1.bf16.msra.mxu0 %v594_v7  ;;  %581 = vmatpush1.bf16.msra.mxu1 %v594_v7 }
  0x13   :  { %221 = vmatprep.subr.bf16.mxu0 %v648_v1  ;;  %572 = vmatprep.subr.bf16.mxu1 %v648_v1 }
  0x14   :  { %9 = vsyncpa [#allocation3], 0  ;;  %v596_v9 = vld [vmem:[%s908_s1 + $0x30] sm:$0xff]   ;;  %vm204_vm1 = vcmask 1040384   ;;  %v597_v10 = vld [vmem:[%s908_s1 + $0x38] sm:$0xff]   ;;  %vm205_vm2 = vcmask 1041408  }
  0x15   :  { %v649_v11 = vmov 65535   ;;  %v598_v13 = vld [vmem:[%s908_s1 + $0x40] sm:$0xff]   ;;  %v599_v14 = vld [vmem:[%s908_s1 + $0x48] ss:$0 sps:$4 sm:$0x33]   ;;  %vm372_vm3 = vcmask 257024  }
  0x16   :  { %222 = vmatpush1.bf16.msra.mxu0 %v595_v8  ;;  %582 = vmatpush1.bf16.msra.mxu1 %v595_v8  ;;  %v206_v12 = vsel %vm204_vm1, 4294967295, %v649_v11  ;;  %v600_v17 = vld [vmem:[%s907_s0] ss:$8 sps:$4 sm:$0xff]   ;;  %v603_v19 = vld [vmem:[%s907_s0 + $0x14] ss:$8 sps:$4 sm:$0xff]   ;;  %vm389_vm4 = vcmask 261120  }
  0x17   :  { %223 = vmatprep.subr.bf16.mxu0 %v648_v1  ;;  %573 = vmatprep.subr.bf16.mxu1 %v648_v1  ;;  %v207_v15 = vsel %vm205_vm2, %v206_v12, 0  ;;  %v606_v18 = vld [vmem:[%s907_s0 + $0x40] ss:$8 sps:$4 sm:$0xff]   ;;  %v612_v20 = vld [vmem:[%s907_s0 + $0x54] ss:$8 sps:$4 sm:$0xff]   ;;  %vm427_vm5 = vcmask 253952  }
  0x18   :  { %v209_v16 = vand.u32 %v599_v14, %v207_v15  ;;  %v605_v21 = vld [vmem:[%s907_s0 + $0x10] ss:$8 sps:$4 sm:$0xff]   ;;  %v609_v23 = vld [vmem:[%s907_s0 + $0x24] ss:$8 sps:$4 sm:$0xff]   ;;  %v611_v25 = vld [vmem:[%s907_s0 + $0x20] ss:$8 sps:$4 sm:$0xff]  }
  0x19   :  { %v614_v22 = vld [vmem:[%s907_s0 + $0x50] ss:$8 sps:$4 sm:$0xff]   ;;  %v618_v24 = vld [vmem:[%s907_s0 + $0x64] ss:$8 sps:$4 sm:$0xff]   ;;  %v620_v26 = vld [vmem:[%s907_s0 + $0x60] ss:$8 sps:$4 sm:$0xff]  }
  0x1a   :  { %224 = vmatpush1.bf16.msra.mxu0 %v596_v9  ;;  %583 = vmatpush1.bf16.msra.mxu1 %v596_v9  ;;  %v615_v27 = vld [vmem:[%s907_s0 + $0x34] ss:$8 sps:$4 sm:$0xff]   ;;  %v617_v29 = vld [vmem:[%s907_s0 + $0x30] ss:$8 sps:$4 sm:$0xff]  }
  0x1b   :  { %225 = vmatprep.subr.bf16.mxu0 %v648_v1  ;;  %574 = vmatprep.subr.bf16.mxu1 %v648_v1  ;;  %v621_v28 = vld [vmem:[%s907_s0 + $0x74] ss:$8 sps:$4 sm:$0xff]   ;;  %v623_v30 = vld [vmem:[%s907_s0 + $0x70] ss:$8 sps:$4 sm:$0xff]  }
  0x1e   :  { %226 = vmatpush1.bf16.msra.mxu0 %v597_v10  ;;  %584 = vmatpush1.bf16.msra.mxu1 %v597_v10 }
  0x1f   :  { %227 = vmatprep.subr.bf16.mxu0 %v648_v1  ;;  %575 = vmatprep.subr.bf16.mxu1 %v648_v1 }
  0x22   :  { %228 = vmatpush1.bf16.msra.mxu0 %v598_v13  ;;  %585 = vmatpush1.bf16.msra.mxu1 %v598_v13 }
  0x23   :  { %229 = vmatprep.subr.bf16.mxu0 %v648_v1  ;;  %576 = vmatprep.subr.bf16.mxu1 %v648_v1 }
  0x26   :  { %230 = vmatpush1.bf16.msra.mxu0 %v209_v16  ;;  %586 = vmatpush1.bf16.msra.mxu1 %v209_v16 }
  0x29   :  { %244 = vmatmul.mubr.bf16.vlgmr.msra.gmra.mrb[0].mxu0 %v600_v17  ;;  %276 = vmatmul.mubr.bf16.vlgmr.msra.gmra.mrb[0].mxu1 %v606_v18 }
  0x2a   :  { %528 = vmatprep.mubr.msk.bf16.mxu0 %vm179_vm0, %v603_v19  ;;  %532 = vmatprep.mubr.msk.bf16.mxu1 %vm179_vm0, %v612_v20 }
  0x31   :  { %252 = vmatmul.mubr.bf16.gmra.mrb[4].mxu0 %v605_v21  ;;  %284 = vmatmul.mubr.bf16.gmra.mrb[4].mxu1 %v614_v22 }
  0x32   :  { %529 = vmatprep.mubr.msk.bf16.mxu0 %vm179_vm0, %v609_v23  ;;  %533 = vmatprep.mubr.msk.bf16.mxu1 %vm179_vm0, %v618_v24 }
  0x39   :  { %260 = vmatmul.mubr.bf16.gmra.mrb[8].mxu0 %v611_v25  ;;  %292 = vmatmul.mubr.bf16.gmra.mrb[8].mxu1 %v620_v26 }
  0x3a   :  { %530 = vmatprep.mubr.msk.bf16.mxu0 %vm179_vm0, %v615_v27  ;;  %534 = vmatprep.mubr.msk.bf16.mxu1 %vm179_vm0, %v621_v28 }
  0x41   :  { %268 = vmatmul.mubr.bf16.gmra.mrb[12].mxu0 %v617_v29  ;;  %300 = vmatmul.mubr.bf16.gmra.mrb[12].mxu1 %v623_v30 }
  0xfc   :  { %v245_v31 = vpop.f32.mrb[0].mxu0  ;;  %v757_v32 = vpop.f32.mrb[0].mxu1 }
  0xfd   :  { %v551_v33 = vpack.c.bf16 %v245_v31, %v245_v31  ;;  %v429_v34 = vmul.f32 %v245_v31, %v245_v31  ;;  %v247_v35 = vpop.f32.mrb[1].mxu0  ;;  %v559_v36 = vpack.c.bf16 %v757_v32, %v757_v32  ;;  %v279_v37 = vpop.f32.mrb[1].mxu1  ;;  %v390_v40 = vsel %vm389_vm4, %v245_v31, 0.0 }
  0xfe   :  { %v248_v38 = vpop.f32.mrb[2].mxu0  ;;  %v761_v39 = vpop.f32.mrb[2].mxu1 }
  0xff   :  { %373 = vst.msk [vmem:[%s909_s2] sm:$0xf] %vm372_vm3, %v551_v33  ;;  %v552_v41 = vpack.c.bf16 %v248_v38, %v248_v38  ;;  %v391_v42 = vsel %vm389_vm4, %v248_v38, 0.0  ;;  %v430_v43 = vmul.f32 %v248_v38, %v248_v38  ;;  %v250_v44 = vpop.f32.mrb[3].mxu0  ;;  %381 = vst.msk [vmem:[%s909_s2 + $0x20] sm:$0xf] %vm372_vm3, %v559_v36  ;;  %v560_v47 = vpack.c.bf16 %v761_v39, %v761_v39 }
 0x100   :  { %v282_v45 = vpop.f32.mrb[3].mxu1  ;;  %v392_v46 = vadd.f32 %v391_v42, %v390_v40  ;;  %v445_v48 = vsel %vm389_vm4, %v429_v34, 0.0 }
 0x101   :  { %374 = vst.msk [vmem:[%s909_s2 + $0x4] sm:$0xf] %vm372_vm3, %v552_v41  ;;  %v446_v49 = vsel %vm389_vm4, %v430_v43, 0.0  ;;  %382 = vst.msk [vmem:[%s909_s2 + $0x24] sm:$0xf] %vm372_vm3, %v560_v47  ;;  %v437_v41 = vmul.f32 %v757_v32, %v757_v32 }
 0x102   :  { %v447_v50 = vadd.f32 %v446_v49, %v445_v48 }
 0x104   :  { %v253_v51 = vpop.f32.mrb[4].mxu0  ;;  %v785_v52 = vpop.f32.mrb[4].mxu1 }
 0x105   :  { %v553_v53 = vpack.c.bf16 %v253_v51, %v253_v51  ;;  %v393_v54 = vsel %vm389_vm4, %v253_v51, 0.0  ;;  %v431_v55 = vmul.f32 %v253_v51, %v253_v51  ;;  %v255_v56 = vpop.f32.mrb[5].mxu0  ;;  %v561_v57 = vpack.c.bf16 %v785_v52, %v785_v52  ;;  %v287_v58 = vpop.f32.mrb[5].mxu1 }
 0x106   :  { %v394_v59 = vadd.f32 %v393_v54, %v392_v46  ;;  %v256_v60 = vpop.f32.mrb[6].mxu0  ;;  %v790_v61 = vpop.f32.mrb[6].mxu1  ;;  %v438_v56 = vmul.f32 %v761_v39, %v761_v39 }
 0x107   :  { %375 = vst.msk [vmem:[%s909_s2 + $0x8] sm:$0xf] %vm372_vm3, %v553_v53  ;;  %v448_v62 = vsel %vm389_vm4, %v431_v55, 0.0  ;;  %v554_v63 = vpack.c.bf16 %v256_v60, %v256_v60  ;;  %v395_v0 = vsel %vm389_vm4, %v256_v60, 0.0  ;;  %v432_v1 = vmul.f32 %v256_v60, %v256_v60  ;;  %v258_v2 = vpop.f32.mrb[7].mxu0  ;;  %v290_v3 = vpop.f32.mrb[7].mxu1 }
 0x108   :  { %383 = vst.msk [vmem:[%s909_s2 + $0x28] sm:$0xf] %vm372_vm3, %v561_v57  ;;  %v449_v4 = vadd.f32 %v448_v62, %v447_v50  ;;  %v396_v5 = vadd.f32 %v395_v0, %v394_v59  ;;  %v562_v6 = vpack.c.bf16 %v790_v61, %v790_v61  ;;  %v405_v55 = vsel %vm389_vm4, %v757_v32, 0.0 }
 0x109   :  { %376 = vst.msk [vmem:[%s909_s2 + $0xc] sm:$0xf] %vm372_vm3, %v554_v63  ;;  %v450_v7 = vsel %vm389_vm4, %v432_v1, 0.0  ;;  %v460_v60 = vsel %vm389_vm4, %v437_v41, 0.0  ;;  %v407_v32 = vsel %vm389_vm4, %v761_v39, 0.0  ;;  %v439_v62 = vmul.f32 %v785_v52, %v785_v52 }
 0x10a   :  { %v451_v8 = vadd.f32 %v450_v7, %v449_v4  ;;  %384 = vst.msk [vmem:[%s909_s2 + $0x2c] sm:$0xf] %vm372_vm3, %v562_v6  ;;  %v462_v1 = vsel %vm389_vm4, %v438_v56, 0.0  ;;  %v409_v2 = vsel %vm389_vm4, %v785_v52, 0.0  ;;  %v440_v3 = vmul.f32 %v790_v61, %v790_v61 }
 0x10b   :  { %v464_v6 = vsel %vm389_vm4, %v439_v62, 0.0  ;;  %v411_v39 = vsel %vm389_vm4, %v790_v61, 0.0 }
 0x10c   :  { %v261_v9 = vpop.f32.mrb[8].mxu0  ;;  %v813_v10 = vpop.f32.mrb[8].mxu1 }
 0x10d   :  { %v555_v11 = vpack.c.bf16 %v261_v9, %v261_v9  ;;  %v397_v12 = vsel %vm389_vm4, %v261_v9, 0.0  ;;  %v433_v13 = vmul.f32 %v261_v9, %v261_v9  ;;  %v263_v14 = vpop.f32.mrb[9].mxu0  ;;  %v563_v15 = vpack.c.bf16 %v813_v10, %v813_v10  ;;  %v295_v16 = vpop.f32.mrb[9].mxu1 }
 0x10e   :  { %v398_v17 = vadd.f32 %v397_v12, %v396_v5  ;;  %v264_v18 = vpop.f32.mrb[10].mxu0  ;;  %v818_v19 = vpop.f32.mrb[10].mxu1  ;;  %v441_v7 = vmul.f32 %v813_v10, %v813_v10  ;;  %v413_v52 = vsel %vm389_vm4, %v813_v10, 0.0 }
 0x10f   :  { %377 = vst.msk [vmem:[%s909_s2 + $0x10] sm:$0xf] %vm372_vm3, %v555_v11  ;;  %v452_v20 = vsel %vm389_vm4, %v433_v13, 0.0  ;;  %v556_v21 = vpack.c.bf16 %v264_v18, %v264_v18  ;;  %v399_v22 = vsel %vm389_vm4, %v264_v18, 0.0  ;;  %v434_v23 = vmul.f32 %v264_v18, %v264_v18  ;;  %v266_v24 = vpop.f32.mrb[11].mxu0  ;;  %v298_v25 = vpop.f32.mrb[11].mxu1 }
 0x110   :  { %385 = vst.msk [vmem:[%s909_s2 + $0x30] sm:$0xf] %vm372_vm3, %v563_v15  ;;  %v453_v26 = vadd.f32 %v452_v20, %v451_v8  ;;  %v400_v27 = vadd.f32 %v399_v22, %v398_v17  ;;  %v564_v28 = vpack.c.bf16 %v818_v19, %v818_v19  ;;  %v466_v11 = vsel %vm389_vm4, %v440_v3, 0.0 }
 0x111   :  { %378 = vst.msk [vmem:[%s909_s2 + $0x14] sm:$0xf] %vm372_vm3, %v556_v21  ;;  %v454_v29 = vsel %vm389_vm4, %v434_v23, 0.0  ;;  %v442_v12 = vmul.f32 %v818_v19, %v818_v19  ;;  %v468_v16 = vsel %vm389_vm4, %v441_v7, 0.0  ;;  %v415_v61 = vsel %vm389_vm4, %v818_v19, 0.0 }
 0x112   :  { %v455_v30 = vadd.f32 %v454_v29, %v453_v26  ;;  %386 = vst.msk [vmem:[%s909_s2 + $0x34] sm:$0xf] %vm372_vm3, %v564_v28 }
 0x113   :  { %v470_v21 = vsel %vm389_vm4, %v442_v12, 0.0 }
 0x114   :  { %v269_v31 = vpop.f32.mrb[12].mxu0  ;;  %v301_v33 = vpop.f32.mrb[12].mxu1 }
 0x115   :  { %v557_v34 = vpack.c.bf16 %v269_v31, %v269_v31  ;;  %v401_v35 = vsel %vm389_vm4, %v269_v31, 0.0  ;;  %v435_v36 = vmul.f32 %v269_v31, %v269_v31  ;;  %v271_v37 = vpop.f32.mrb[13].mxu0  ;;  %v565_v38 = vpack.c.bf16 %v301_v33, %v301_v33  ;;  %v303_v40 = vpop.f32.mrb[13].mxu1 }
 0x116   :  { %v402_v42 = vadd.f32 %v401_v35, %v400_v27  ;;  %v272_v43 = vpop.f32.mrb[14].mxu0  ;;  %v304_v44 = vpop.f32.mrb[14].mxu1  ;;  %v443_v13 = vmul.f32 %v301_v33, %v301_v33  ;;  %v417_v17 = vsel %vm389_vm4, %v301_v33, 0.0 }
 0x117   :  { %379 = vst.msk [vmem:[%s909_s2 + $0x18] sm:$0xf] %vm372_vm3, %v557_v34  ;;  %v456_v45 = vsel %vm389_vm4, %v435_v36, 0.0  ;;  %v558_v46 = vpack.c.bf16 %v272_v43, %v272_v43  ;;  %v403_v47 = vsel %vm389_vm4, %v272_v43, 0.0  ;;  %v436_v48 = vmul.f32 %v272_v43, %v272_v43  ;;  %v274_v49 = vpop.f32.mrb[15].mxu0  ;;  %v306_v50 = vpop.f32.mrb[15].mxu1 }
 0x118   :  { %387 = vst.msk [vmem:[%s909_s2 + $0x38] sm:$0xf] %vm372_vm3, %v565_v38  ;;  %v457_v51 = vadd.f32 %v456_v45, %v455_v30  ;;  %v404_v53 = vadd.f32 %v403_v47, %v402_v42  ;;  %v566_v54 = vpack.c.bf16 %v304_v44, %v304_v44  ;;  %v472_v22 = vsel %vm389_vm4, %v443_v13, 0.0 }
 0x119   :  { %380 = vst.msk [vmem:[%s909_s2 + $0x1c] sm:$0xf] %vm372_vm3, %v558_v46  ;;  %v458_v57 = vsel %vm389_vm4, %v436_v48, 0.0  ;;  %v444_v10 = vmul.f32 %v304_v44, %v304_v44  ;;  %v419_v25 = vsel %vm389_vm4, %v304_v44, 0.0 }
 0x11a   :  { %v406_v58 = vadd.f32 %v405_v55, %v404_v53  ;;  %v459_v59 = vadd.f32 %v458_v57, %v457_v51  ;;  %388 = vst.msk [vmem:[%s909_s2 + $0x3c] sm:$0xf] %vm372_vm3, %v566_v54  ;;  %s650_s2 = smov [#allocation2]  }
 0x11b   :  { %v474_v28 = vsel %vm389_vm4, %v444_v10, 0.0  ;;  %s491_s11 = sshll.u32 %s650_s2, 4  ;;  %s492_s11 = int_to_ptr.vmem [resolvable:$true] %s491_s11 }
 0x11c   :  { %v408_v63 = vadd.f32 %v407_v32, %v406_v58  ;;  %v461_v0 = vadd.f32 %v460_v60, %v459_v59  ;;  %s624_s12 = scalar_lea.vmem %s492_s11, 32  ;;  %p629_p1 = scmp.lt.s32.totalorder %s492_s11, %s492_s11 }
 0x11d   :  { %p625_p0 = scmp.ne.s32.totalorder %s492_s11, %s624_s12  ;;  %p630_p2 = scmp.lt.s32.totalorder %s624_s12, %s624_s12 }
 0x11e   :  { %v463_v4 = vadd.f32 %v462_v1, %v461_v0  ;;  %v410_v5 = vadd.f32 %v409_v2, %v408_v63 }
 0x11f   :  { %p631_p3 = por %p630_p2, %p629_p1 }
 0x120   :  { %v412_v8 = vadd.f32 %v411_v39, %v410_v5  ;;  %v465_v9 = vadd.f32 %v464_v6, %v463_v4 }
 0x121   :  { %p632_p4 = pnand %p631_p3, %p625_p0 }
 0x122   :  { %v414_v14 = vadd.f32 %v413_v52, %v412_v8  ;;  %v467_v15 = vadd.f32 %v466_v11, %v465_v9 }
 0x124   :  { %v469_v18 = vadd.f32 %v468_v16, %v467_v15  ;;  %v416_v20 = vadd.f32 %v415_v61, %v414_v14 }
 0x126   :  { %v471_v23 = vadd.f32 %v470_v21, %v469_v18  ;;  %v418_v24 = vadd.f32 %v417_v17, %v416_v20 }
 0x128   :  { %v473_v26 = vadd.f32 %v472_v22, %v471_v23  ;;  %v420_v27 = vadd.f32 %v419_v25, %v418_v24 }
 0x12a   :  { %v421_v29 = vrot.slane %v420_v27, 4  ;;  %v475_v30 = vadd.f32 %v474_v28, %v473_v26 }
 0x12c   :  { %v422_v19 = vadd.f32 %v421_v29, %v420_v27  ;;  %v476_v31 = vrot.slane %v475_v30, 4 }
 0x12e   :  { %v423_v33 = vrot.slane %v422_v19, 2  ;;  %v477_v34 = vadd.f32 %v476_v31, %v475_v30 }
 0x130   :  { %v424_v35 = vadd.f32 %v423_v33, %v422_v19  ;;  %v478_v36 = vrot.slane %v477_v34, 2 }
 0x132   :  { %v425_v37 = vrot.slane %v424_v35, 1  ;;  %v479_v38 = vadd.f32 %v478_v36, %v477_v34 }
 0x134   :  { %v426_v40 = vadd.f32 %v425_v37, %v424_v35  ;;  %v480_v41 = vrot.slane %v479_v38, 1 }
 0x136   :  { %428 = vst.msk [vmem:[#allocation2] sm:$0x1] %vm427_vm5, %v426_v40  ;;  %v481_v42 = vadd.f32 %v480_v41, %v479_v38 }
 0x138   :  { %482 = vst.msk [vmem:[#allocation2 + $0x1] sm:$0x1] %vm427_vm5, %v481_v42 }
 0x139   :  { %635 = shalt.err (!%p632_p4)
}
 0x13a   :  { %s636_s14 = scalar_lea.hbm %s910_s3, 32 }
 0x13b   :  { %p637_p5 = scmp.ne.s32.totalorder %s910_s3, %s636_s14  ;;  %p640_p6 = scmp.lt.u32.totalorder %s636_s14, %s910_s3 }
 0x13d   :  { %p642_p7 = pnand %p640_p6, %p637_p5 }
 0x13f   :  { %645 = shalt.err (!%p642_p7)
}
 0x140   :  { %494 = dma.vmem_to_hbm [thread:$0]  %s492_s11, 32, %s910_s3, [#allocation3]  }
 0x141   :  { %646 = dma.done.wait [#allocation3], 32  }
 0x142   :  { %647 = vsyncadd [#allocation3], 4294967264 }
 0x143   :  { %500 = vsyncpa [#allocation3], 1 }

</bundles_post_ra>
